<compile_context>
chip_gen: v5e
topology: v5e:2x2
jax: 0.10.0
libtpu: 0.0.40
codegen_flags: <defaults>
</compile_context>

<pallas_src>
import functools
from dataclasses import dataclass

import jax
import jax.numpy as jnp
from jax.experimental import pallas as pl
from jax.experimental.pallas import tpu as pltpu


F_SPATIAL = 8  # VAE spatial upsample factor "F" in the reference forward
# Conservative scoped-VMEM cap: safe on v5e/v6e (128 MiB physical) AND v7x
# (64 MiB physical per TC).  Tile sizes below are chosen to double-buffer well
# under this on every generation.
_VMEM_LIMIT = 32 * 1024 * 1024


# --------------------------- elementwise kernel ----------------------------- #

def _affine_clamp_kernel(x_ref, o_ref, *, scale, shift, lo, hi):
    """y = clamp(x * scale + shift, lo, hi)."""
    y = x_ref[...] * scale + shift
    if lo is not None:
        y = jnp.clip(y, lo, hi)
    o_ref[...] = y.astype(o_ref.dtype)


def _pick_2d_layout(total):
    """Pick (rows, lane) with lane a multiple of 128, capped at 4096 lanes.

    Bounded lane width (review item: don't greedily merge trailing dims into a
    whole-frame row) keeps tiles ~1 MiB with proper double-buffering on all
    generations, including v7x's 64 MiB VMEM.
    """
    for lane in (4096, 2048, 1024, 512, 256, 128):
        if total % lane == 0:
            return total // lane, lane
    return 1, total  # tiny / odd sizes: single (masked) row


def affine_clamp(x, scale, shift, lo=None, hi=None, row_block=1024):
    """Elementwise affine + clamp as a lane-dense, row-tiled Pallas kernel."""
    total = x.size
    rows, lane = _pick_2d_layout(total)
    x2 = x.reshape(rows, lane)                 # contiguous -> free XLA reshape
    tile_rows = rows if rows <= row_block else row_block   # mult-of-8 or full
    grid = (pl.cdiv(rows, tile_rows),)
    out = pl.pallas_call(
        functools.partial(_affine_clamp_kernel, scale=scale, shift=shift, lo=lo, hi=hi),
        out_shape=jax.ShapeDtypeStruct((rows, lane), x.dtype),
        grid=grid,
        in_specs=[pl.BlockSpec((tile_rows, lane), lambda i: (i, 0))],
        out_specs=pl.BlockSpec((tile_rows, lane), lambda i: (i, 0)),
        compiler_params=pltpu.CompilerParams(
            dimension_semantics=("parallel",),
            vmem_limit_bytes=_VMEM_LIMIT,
        ),
    )(x2)
    return out.reshape(x.shape)


# ------------- fused decoder + post-process + layout kernel ----------------- #

def _decode_write_kernel(x_ref, w_ref, b_ref, o_ref, *, h_blk, c_lat):
    """Decode h_blk latent rows of one (batch, frame, RGB-channel) directly into
    the final video layout and store them exactly once.

    x_ref: (c_lat, h_blk, L)   latent, lane-expanded by F (x[c, hr, wc*F+fc] = lat[c, hr, wc])
    w_ref: (c_lat, F, L)       folded f32 weights, lane-tiled over latent width
    b_ref: (F, L)              folded f32 bias,    lane-tiled over latent width
    o_ref: (h_blk*F, L)        slice of the final (b, 3, t, h*F, w*F) f32 video

    out[r*F + fr, wc*F + fc] = clamp(bias + sum_c W[c, fr, fc] * lat[c, r, wc], 0, 1)
    Pure VPU broadcast-FMAs (C_lat terms) + one lane-dense store; no in-kernel
    transpose / reshape / matmul needed, so the kernel stays store-bound.
    """
    bias = b_ref[...]                                        # (F, L) f32
    for r in range(h_blk):                                   # static unroll
        acc = bias
        for c in range(c_lat):                               # K = C_lat is tiny
            xrow = x_ref[c, r:r + 1, :].astype(jnp.float32)  # (1, L)
            acc = acc + w_ref[c] * xrow                      # (F, L), row-broadcast
        o_ref[r * F_SPATIAL:(r + 1) * F_SPATIAL, :] = (
            jnp.clip(acc, 0.0, 1.0).astype(o_ref.dtype))


def decode_latent_postprocess(samples_z, dec_w, dec_b, scale_factor, h_block=None):
    """Fused port of decode_latent (stand-in per-pixel VAE decoder) + _post_process_cog_video.

    samples_z: (b, T, C_lat, h, w) -> (b, 3, t_out, h*F, w*F) float32 in [0, 1].

    # TODO(synk): the real CogVideoX 3D causal VAE decoder (conv stacks, temporal
    # upsampling, fake-CP cache, per-chunk decode) has no clean Pallas equivalent;
    # a deterministic per-latent-pixel linear decoder (C_lat -> 3*F*F) stands in.
    # For a per-pixel decoder, concatenating the reference's frame chunks along T
    # is identical to decoding frames [0:t_out] in one shot, so everything is one
    # pallas_call.
    """
    b, t_lat, c_lat, h, w = samples_z.shape
    loop_num = (t_lat - 1) // 2
    t_out = 2 * loop_num + 1
    lane = w * F_SPATIAL            # final video width  W = w*F (full-row stores)
    height = h * F_SPATIAL          # final video height H = h*F

    # Lane-expanded latent: x_exp[b, t, c, hr, wc*F + fc] = latent[b, t, c, hr, wc].
    # Small (latent dtype, ~1/12 of the f32 video); replaces the old host-side
    # transpose+reshape and lets the kernel emit the final layout directly.
    lat = samples_z[:, :t_out]
    x_exp = jnp.repeat(lat, F_SPATIAL, axis=-1)              # (b, t_out, c, h, L)

    # Fold 1/scale_factor AND the (y + 1) * 0.5 post-process into f32 constants
    # (exact for the linear stand-in decoder; weights stay f32 -> no re-rounding).
    w_eff = dec_w.astype(jnp.float32) * (0.5 / scale_factor)           # (c, 3*F*F)
    b_eff = (dec_b.astype(jnp.float32) + 1.0) * 0.5                    # (1, 3*F*F)
    # Lane-tile over the latent width: w_lane[ch, c, fr, wc*F + fc] = w_eff[c, ch, fr, fc].
    w_lane = jnp.tile(
        jnp.transpose(w_eff.reshape(c_lat, 3, F_SPATIAL, F_SPATIAL), (1, 0, 2, 3)),
        (1, 1, 1, w))                                                  # (3, c, F, L)
    b_lane = jnp.tile(b_eff.reshape(3, F_SPATIAL, F_SPATIAL), (1, 1, w))   # (3, F, L)

    # Row blocking: target ~2 MiB output tiles (amortizes per-step overhead,
    # keeps double-buffering well under the VMEM cap on every generation).
    if h_block is None:
        per_row = F_SPATIAL * lane * 4          # output bytes per latent row / channel
        if h * per_row <= 4 * 1024 * 1024:
            h_block = h                         # whole height per step
        else:
            h_block = h
            for d in range(8 * (h // 8), 0, -8):        # mult-of-8 divisor of h
                if h % d == 0 and d * per_row <= 2 * 1024 * 1024:
                    h_block = d
                    break
    n_h = pl.cdiv(h, h_block)

    # Grid: (batch, frame, h-tile, RGB-channel).  The channel axis is fastest so
    # the latent tile is DMA'd once per (b, t, h-tile); every step writes a
    # distinct block of the final video -> all axes "parallel" (>=3 steps, so
    # v7x's two TensorCores both get work even at tiny shapes).
    out = pl.pallas_call(
        functools.partial(_decode_write_kernel, h_blk=h_block, c_lat=c_lat),
        out_shape=jax.ShapeDtypeStruct((b, 3, t_out, height, lane), jnp.float32),
        grid=(b, t_out, n_h, 3),
        in_specs=[
            pl.BlockSpec((None, None, c_lat, h_block, lane),
                         lambda bi, ti, hi, ch: (bi, ti, 0, hi, 0)),
            pl.BlockSpec((None, c_lat, F_SPATIAL, lane),
                         lambda bi, ti, hi, ch: (ch, 0, 0, 0)),
            pl.BlockSpec((None, F_SPATIAL, lane),
                         lambda bi, ti, hi, ch: (ch, 0, 0)),
        ],
        out_specs=pl.BlockSpec((None, None, None, h_block * F_SPATIAL, lane),
                               lambda bi, ti, hi, ch: (bi, ch, ti, hi, 0)),
        compiler_params=pltpu.CompilerParams(
            dimension_semantics=("parallel", "parallel", "parallel", "parallel"),
            vmem_limit_bytes=_VMEM_LIMIT,
        ),
    )(x_exp, w_lane, b_lane)
    return out


# ------------------------------- module port -------------------------------- #

@dataclass
class CogOutput:
    video: jnp.ndarray
    latent: jnp.ndarray


def cog_forward(mp4, samples_z, dec_w, dec_b, scale_factor):
    """Port of CogWrapper.forward for the tensor-valued compute path."""
    # 'b c t h w -> b t c h w' + _pre_process_cog_video (lane-dense Pallas elementwise).
    if mp4 is not None:
        mp4 = jnp.transpose(mp4, (0, 2, 1, 3, 4))
        mp4 = affine_clamp(mp4, 2.0, -1.0, -1.0, 1.0)
    # TODO(synk): text conditioner / get_unconditional_conditioning and the diffusion
    # sampler (model.sample) are not translatable; `samples_z` stands in for the
    # sampler output (b, t, c, h, w) and `mp4` is only prepared as its conditioning.
    samples = decode_latent_postprocess(samples_z, dec_w, dec_b, scale_factor)
    # Output dtype stays float32 to match the reference (.to(torch.float32)).
    return CogOutput(video=samples, latent=samples_z)


# -------------------------- plain-JAX reference ------------------------------ #

def _reference_forward(samples_z, dec_w, dec_b, scale_factor):
    """Un-fused f32 reference mirroring the original chunked decode_latent + post-process."""
    lat = jnp.transpose(samples_z, (0, 2, 1, 3, 4)).astype(jnp.float32)  # b c t h w
    lat = lat * (1.0 / scale_factor)
    t_lat = lat.shape[2]
    loop_num = (t_lat - 1) // 2
    w32 = dec_w.astype(jnp.float32)
    b32 = dec_b.astype(jnp.float32)
    recons = []
    for i in range(loop_num):
        s, e = (0, 3) if i == 0 else (2 * i + 1, 2 * i + 3)
        chunk = lat[:, :, s:e]
        b, c, tc, h, w = chunk.shape
        xx = jnp.transpose(chunk, (0, 2, 3, 4, 1)).reshape(-1, c)
        # exact f32 contraction (avoid TPU default-precision matmul in the reference)
        yy = jnp.sum(xx[:, :, None] * w32[None, :, :], axis=1) + b32
        yy = yy.reshape(b, tc, h, w, 3, F_SPATIAL, F_SPATIAL)
        yy = jnp.transpose(yy, (0, 4, 1, 2, 5, 3, 6))
        recons.append(yy.reshape(b, 3, tc, h * F_SPATIAL, w * F_SPATIAL))
    recon = jnp.concatenate(recons, axis=2).astype(jnp.float32)
    return jnp.clip((recon + 1.0) / 2.0, 0.0, 1.0)


# ----------------------------------- main ------------------------------------ #

if __name__ == "__main__":
    key = jax.random.PRNGKey(0)
    k_video, k_lat, k_w = jax.random.split(key, 3)

    fwd_dtype = jnp.bfloat16
    scale_factor = 1.15258426     # CogVideoX latent scale factor

    # Small shapes consistent with the forward pass:
    b, c_rgb, t_in, H, W = 1, 3, 8, 16, 16          # input conditioning video (NCTHW)
    T_lat, C_lat = 5, 4                             # latent frames / channels
    Hl, Wl = H // F_SPATIAL, W // F_SPATIAL         # latent spatial = (2, 2)

    video = jax.random.uniform(k_video, (b, c_rgb, t_in, H, W), jnp.float32)   # in [0, 1]
    samples_z = jax.random.normal(k_lat, (b, T_lat, C_lat, Hl, Wl)).astype(fwd_dtype)

    # Deterministic stand-in decoder parameters: C_lat -> 3 * F * F per latent pixel.
    dec_w = (0.1 * jax.random.normal(k_w, (C_lat, 3 * F_SPATIAL * F_SPATIAL))).astype(fwd_dtype)
    dec_b = jnp.zeros((1, 3 * F_SPATIAL * F_SPATIAL), dtype=fwd_dtype)

    out = cog_forward(video, samples_z, dec_w, dec_b, scale_factor)
    jax.block_until_ready(out.video)
    jax.block_until_ready(out.latent)

    # Shape / dtype / range checks (module semantics).
    assert out.video.shape == (b, 3, T_lat, H, W)
    assert out.video.dtype == jnp.float32
    assert float(out.video.min()) >= 0.0 and float(out.video.max()) <= 1.0
    assert out.latent.shape == (b, T_lat, C_lat, Hl, Wl)

    # Numerical check vs. the un-fused, chunked f32 reference.  Weights/bias stay
    # f32 in the fused kernel, so only f32 re-association error remains.
    ref_video = _reference_forward(samples_z, dec_w, dec_b, scale_factor)
    max_err = float(jnp.max(jnp.abs(out.video - ref_video)))
    assert max_err < 1e-4, f"decoded video mismatch vs reference: {max_err}"

    # Pre-process kernel check (pure f32 elementwise -> tight tolerance).
    mp4_t = jnp.transpose(video, (0, 2, 1, 3, 4))
    pre = affine_clamp(mp4_t, 2.0, -1.0, -1.0, 1.0)
    assert bool(jnp.allclose(pre, jnp.clip(mp4_t * 2.0 - 1.0, -1.0, 1.0), atol=1e-6))

    print("KERNEL_OK")
</pallas_src>

<mosaic_0001>
module attributes {stable_mosaic.version = 11 : i64} {
  func.func @_affine_clamp_kernel(%arg0: i32, %arg1: memref<3x2048xf32, #tpu.memory_space<vmem>>, %arg2: memref<3x2048xf32, #tpu.memory_space<vmem>>) attributes {dimension_semantics = [#tpu.dimension_semantics<parallel>], iteration_bounds = array<i64: 1>, scalar_prefetch = 0 : i64, scratch_operands = 0 : i64, tpu.core_type = #tpu.core_type<tc>, window_params = [{transform_indices = @transform_0, window_bounds = array<i64: 3, 2048>}, {transform_indices = @transform_1, window_bounds = array<i64: 3, 2048>}]} {
    %c0 = arith.constant 0 : index
    %c0_0 = arith.constant 0 : index
    %0 = vector.load %arg1[%c0, %c0_0] : memref<3x2048xf32, #tpu.memory_space<vmem>>, vector<3x2048xf32>
    %cst = arith.constant 2.000000e+00 : f32
    %1 = vector.broadcast %cst : f32 to vector<3x2048xf32>
    %2 = arith.mulf %0, %1 : vector<3x2048xf32>
    %cst_1 = arith.constant -1.000000e+00 : f32
    %3 = vector.broadcast %cst_1 : f32 to vector<3x2048xf32>
    %4 = arith.addf %2, %3 : vector<3x2048xf32>
    %cst_2 = arith.constant -1.000000e+00 : f32
    %cst_3 = arith.constant 1.000000e+00 : f32
    %5 = vector.broadcast %cst_2 : f32 to vector<3x2048xf32>
    %6 = arith.maximumf %5, %4 : vector<3x2048xf32>
    %7 = vector.broadcast %cst_3 : f32 to vector<3x2048xf32>
    %8 = arith.minimumf %7, %6 : vector<3x2048xf32>
    %c0_4 = arith.constant 0 : index
    %c0_5 = arith.constant 0 : index
    %9 = vector.load %arg2[%c0_4, %c0_5] : memref<3x2048xf32, #tpu.memory_space<vmem>>, vector<3x2048xf32>
    tpu.vector_store %arg2[%c0_4, %c0_5], %8 {strides = array<i32>} : memref<3x2048xf32, #tpu.memory_space<vmem>>, vector<3x2048xf32>,
    return
  }
  func.func @transform_0(%arg0: i32) -> (i32, i32) {
    %c0_i32 = arith.constant 0 : i32
    %c0_i32_0 = arith.constant 0 : i32
    return %arg0, %c0_i32 : i32, i32
  }
  func.func @transform_1(%arg0: i32) -> (i32, i32) {
    %c0_i32 = arith.constant 0 : i32
    %c0_i32_0 = arith.constant 0 : i32
    return %arg0, %c0_i32 : i32, i32
  }
}

</mosaic_0001>

<bundles_post_ra>
// kernel: tpu_custom_call.1
= control target key start
LH: loop header
LB: loop body
LE: loop exit
PB: predicated region body
PF: predicated region fallthrough
CT: control target
= control target key end

     0   :  { %6 = vsyncpa [#allocation3], 0  ;;  %s168_s0 = inlined_call_operand.hbm [shape: f32[3,2048], index: 0, kind: input, shape index: {}]   ;;  %s169_s1 = inlined_call_operand.hbm [shape: f32[3,2048], index: 1, kind: output, shape index: {}]  }
   0x1   :  { %7 = vsyncpa [#allocation4], 0  ;;  %s13_s8 = sshll.u32 %s168_s0, 4  ;;  %s150_s9 = smov [#allocation2]   ;;  %s14_s8 = int_to_ptr.hbm [resolvable:$true] %s13_s8 }
   0x2   :  { %s15_s10 = sshll.u32 %s150_s9, 4  ;;  %s16_s10 = int_to_ptr.vmem [resolvable:$true] %s15_s10 }
   0x3   :  { %18 = dma.hbm_to_vmem [thread:$0]  %s14_s8, 1024, %s16_s10, [#allocation3]  }
   0x4   :  { %146 = dma.done.wait [#allocation3], 1024  }
   0x5   :  { %147 = vsyncadd [#allocation3], 4294966272  ;;  %v23_v0 = vld [vmem:[#allocation2] sm:$0x77]  ;;  %v24_v1 = vld [vmem:[#allocation2 + $0x8] sm:$0x77] }
   0x6   :  { %v25_v2 = vld [vmem:[#allocation2 + $0x10] sm:$0x77]  ;;  %v31_v3 = vmul.f32 2.0, %v23_v0  ;;  %v32_v4 = vmul.f32 2.0, %v24_v1  ;;  %v26_v6 = vld [vmem:[#allocation2 + $0x18] sm:$0x77] }
   0x7   :  { %v33_v5 = vmul.f32 2.0, %v25_v2  ;;  %v34_v7 = vmul.f32 2.0, %v26_v6  ;;  %v27_v8 = vld [vmem:[#allocation2 + $0x20] sm:$0x77]  ;;  %v28_v9 = vld [vmem:[#allocation2 + $0x28] sm:$0x77] }
   0x8   :  { %v39_v10 = vadd.f32 -1.0, %v31_v3  ;;  %v40_v11 = vadd.f32 -1.0, %v32_v4  ;;  %v35_v13 = vmul.f32 2.0, %v27_v8  ;;  %v29_v14 = vld [vmem:[#allocation2 + $0x30] sm:$0x77]  ;;  %v36_v16 = vmul.f32 2.0, %v28_v9 }
   0x9   :  { %v41_v12 = vadd.f32 -1.0, %v33_v5  ;;  %v42_v15 = vadd.f32 -1.0, %v34_v7  ;;  %v37_v17 = vmul.f32 2.0, %v29_v14  ;;  %v30_v18 = vld [vmem:[#allocation2 + $0x38] sm:$0x77]  ;;  %s151_s0 = smov [#allocation5]  }
   0xa   :  { %v88_v19 = vclamps-f32 %v39_v10, 1.0  ;;  %v89_v20 = vclamps-f32 %v40_v11, 1.0  ;;  %v43_v22 = vadd.f32 -1.0, %v35_v13  ;;  %v44_v24 = vadd.f32 -1.0, %v36_v16  ;;  %s76_s11 = sshll.u32 %s151_s0, 4  ;;  %s78_s14 = sshll.u32 %s169_s1, 4  ;;  %s77_s11 = int_to_ptr.vmem [resolvable:$true] %s76_s11  ;;  %s79_s14 = int_to_ptr.hbm [resolvable:$true] %s78_s14 }
   0xb   :  { %v90_v21 = vclamps-f32 %v41_v12, 1.0  ;;  %v91_v23 = vclamps-f32 %v42_v15, 1.0  ;;  %v45_v25 = vadd.f32 -1.0, %v37_v17  ;;  %v38_v26 = vmul.f32 2.0, %v30_v18 }
   0xc   :  { %63 = vst [vmem:[#allocation5] sm:$0x77] %v88_v19  ;;  %v92_v27 = vclamps-f32 %v43_v22, 1.0  ;;  %v93_v28 = vclamps-f32 %v44_v24, 1.0 }
   0xd   :  { %64 = vst [vmem:[#allocation5 + $0x8] sm:$0x77] %v89_v20  ;;  %v46_v29 = vadd.f32 -1.0, %v38_v26  ;;  %v94_v30 = vclamps-f32 %v45_v25, 1.0 }
   0xe   :  { %65 = vst [vmem:[#allocation5 + $0x10] sm:$0x77] %v90_v21 }
   0xf   :  { %66 = vst [vmem:[#allocation5 + $0x18] sm:$0x77] %v91_v23  ;;  %v95_v31 = vclamps-f32 %v46_v29, 1.0 }
  0x10   :  { %67 = vst [vmem:[#allocation5 + $0x20] sm:$0x77] %v92_v27 }
  0x11   :  { %68 = vst [vmem:[#allocation5 + $0x28] sm:$0x77] %v93_v28 }
  0x12   :  { %69 = vst [vmem:[#allocation5 + $0x30] sm:$0x77] %v94_v30 }
  0x13   :  { %70 = vst [vmem:[#allocation5 + $0x38] sm:$0x77] %v95_v31 }
  0x14   :  { %81 = dma.vmem_to_hbm [thread:$0]  %s77_s11, 1024, %s79_s14, [#allocation4]  }
  0x15   :  { %148 = dma.done.wait [#allocation4], 1024  }
  0x16   :  { %149 = vsyncadd [#allocation4], 4294966272 }
  0x17   :  { %86 = vsyncpa [#allocation3], 1 }
  0x18   :  { %87 = vsyncpa [#allocation4], 1 }

</bundles_post_ra>
